<compile_context>
chip_gen: v7x
topology: tpu7x:2x2x1
jax: 0.10.0
libtpu: 0.0.40
codegen_flags: <defaults>
</compile_context>

<pallas_src>
import functools

import jax
import jax.numpy as jnp
from jax import lax
from jax.experimental import pallas as pl
from jax.experimental.pallas import tpu as pltpu


def _hash_u32(v):
    """splitmix32-style finalizer on uint32 vectors (plain VPU int ops)."""
    v = (v ^ (v >> jnp.uint32(16))) * jnp.uint32(0x7FEB352D)
    v = (v ^ (v >> jnp.uint32(15))) * jnp.uint32(0x846CA68B)
    v = v ^ (v >> jnp.uint32(16))
    return v


def _sublayer_conn_kernel(seed_ref, x_ref, w_ref, b_ref, gamma_ref, beta_ref,
                          o_ref, *, p, eps, tm, H):
    """One row tile: o = LayerNorm(x + dropout(x @ w + b)) over the last axis."""
    x = x_ref[...].astype(jnp.float32)                         # (tm, H)

    # Fused sublayer: Linear(H, H) on the MXU (no HBM round-trip for y).
    y = jnp.dot(x, w_ref[...].astype(jnp.float32),
                precision=lax.Precision.HIGHEST,
                preferred_element_type=jnp.float32)
    y = y + b_ref[...].astype(jnp.float32)                     # (1, H) broadcasts

    if p > 0.0:
        # Stateless counter-based dropout: hash(global element index ^ seed),
        # keep iff bits < (1-p) * 2^32.  No pltpu PRNG, no cross-step state.
        row0 = pl.program_id(0) * tm
        rows = row0 + lax.broadcasted_iota(jnp.int32, (tm, H), 0)
        cols = lax.broadcasted_iota(jnp.int32, (tm, H), 1)
        idx = (rows * H + cols).astype(jnp.uint32)
        seed_u = seed_ref[0].astype(jnp.uint32) * jnp.uint32(0x9E3779B9)
        bits = _hash_u32(idx ^ seed_u)
        thresh = jnp.uint32(min(int(round((1.0 - p) * 4294967296.0)), 0xFFFFFFFF))
        keep = bits < thresh
        y = jnp.where(keep, y * (1.0 / (1.0 - p)), 0.0)        # inverted dropout

    z = x + y                                                  # residual add

    # LayerNorm over the hidden (last) axis, f32 statistics.
    mean = jnp.mean(z, axis=-1, keepdims=True)
    var = jnp.mean(jnp.square(z - mean), axis=-1, keepdims=True)
    z_hat = (z - mean) * lax.rsqrt(var + eps)

    o_ref[...] = (z_hat * gamma_ref[...].astype(jnp.float32)
                  + beta_ref[...].astype(jnp.float32)).astype(o_ref.dtype)


def sublayer_connection(x, w, b, gamma, beta, *, dropout_p, eps=1e-5, seed=0,
                        tm=None):
    """x: [B, S, H]; sublayer = Linear(w: [H, H], b: [H]) fused into the kernel.

    Returns LayerNorm(x + dropout(x @ w + b)) with affine params gamma/beta.
    """
    B, S, H = x.shape
    R = B * S
    x2 = x.reshape(R, H)

    if tm is None:
        # ~8 live f32 copies of a (tm, H) tile (double-buffered in/out tiles +
        # f32 temporaries).  An 8 MiB budget keeps the footprint well inside
        # the scoped-VMEM limit on every generation (v5e 16 MiB default,
        # v6e 32 MiB, v7x 32 MiB scoped / 64 MiB physical).
        tm = max(8, min(1024, (8 << 20) // (32 * H)))
        tm = (tm // 8) * 8
        tm = min(tm, ((R + 7) // 8) * 8)       # don't over-pad tiny inputs

    R_pad = pl.cdiv(R, tm) * tm
    if R_pad != R:
        x2 = jnp.pad(x2, ((0, R_pad - R), (0, 0)))  # padded rows are discarded

    w2 = w.astype(jnp.float32)
    b2 = b.reshape(1, H).astype(jnp.float32)
    g2 = gamma.reshape(1, H).astype(jnp.float32)
    bt2 = beta.reshape(1, H).astype(jnp.float32)
    seed_arr = jnp.array([seed], dtype=jnp.int32)

    kernel = functools.partial(_sublayer_conn_kernel, p=float(dropout_p),
                               eps=float(eps), tm=tm, H=H)

    itemsize = jnp.dtype(x.dtype).itemsize
    cost = pl.CostEstimate(
        flops=2 * R_pad * H * H + 12 * R_pad * H,
        transcendentals=0,
        bytes_accessed=(2 * R_pad * H) * itemsize + (H * H + 3 * H) * 4,
    )

    # NOTE: for small H (< 128) the last dim of the blocks is not lane-dense;
    # production H should be a multiple of 128 so loads/stores use full lanes.
    out = pl.pallas_call(
        kernel,
        out_shape=jax.ShapeDtypeStruct((R_pad, H), x.dtype),
        grid_spec=pltpu.PrefetchScalarGridSpec(
            num_scalar_prefetch=1,                 # seed lands in SMEM
            grid=(R_pad // tm,),
            in_specs=[
                pl.BlockSpec((tm, H), lambda i, seed: (i, 0)),   # x rows
                pl.BlockSpec((H, H), lambda i, seed: (0, 0)),    # w (resident)
                pl.BlockSpec((1, H), lambda i, seed: (0, 0)),    # b (resident)
                pl.BlockSpec((1, H), lambda i, seed: (0, 0)),    # gamma
                pl.BlockSpec((1, H), lambda i, seed: (0, 0)),    # beta
            ],
            out_specs=pl.BlockSpec((tm, H), lambda i, seed: (i, 0)),
        ),
        compiler_params=pltpu.CompilerParams(
            # Stateless per-element PRNG -> row axis is embarrassingly parallel
            # (lets v7x shard the grid across its 2 TensorCores).
            dimension_semantics=("parallel",),
            vmem_limit_bytes=32 * 1024 * 1024,
        ),
        cost_estimate=cost,
    )(seed_arr, x2, w2, b2, g2, bt2)
    return out[:R].reshape(B, S, H)


def _reference(x, w, b, gamma, beta, eps=1e-5):
    """Pure-JAX reference with dropout disabled (eval-mode forward)."""
    y = jnp.einsum("bsh,hk->bsk", x, w, precision="highest") + b
    z = x + y
    mean = jnp.mean(z, axis=-1, keepdims=True)
    var = jnp.mean(jnp.square(z - mean), axis=-1, keepdims=True)
    return (z - mean) * lax.rsqrt(var + eps) * gamma + beta


if __name__ == "__main__":
    B, S, H = 2, 8, 32          # size = H = 32
    dropout_p = 0.1

    key = jax.random.PRNGKey(0)
    kx, kw, kb = jax.random.split(key, 3)

    x = jax.random.normal(kx, (B, S, H), dtype=jnp.float32)

    # nn.LayerNorm(size) defaults: weight = 1, bias = 0.
    gamma = jnp.ones((H,), dtype=jnp.float32)
    beta = jnp.zeros((H,), dtype=jnp.float32)
    # The sublayer (argument of forward) instantiated as Linear(H, H).
    # TODO(synk): arbitrary (non-Linear) sublayers can't be fused in-kernel;
    # compute them outside and pass their output instead.
    w = jax.random.normal(kw, (H, H), dtype=jnp.float32) * (1.0 / jnp.sqrt(H))
    b = jax.random.normal(kb, (H,), dtype=jnp.float32) * 0.01

    # Correctness check with dropout disabled (deterministic path).
    out_nodrop = sublayer_connection(x, w, b, gamma, beta, dropout_p=0.0)
    ref = _reference(x, w, b, gamma, beta)
    assert jnp.allclose(out_nodrop, ref, atol=1e-4, rtol=1e-4), \
        "mismatch vs reference"

    # Training-mode path with in-kernel (hash-based) dropout.
    out = sublayer_connection(x, w, b, gamma, beta, dropout_p=dropout_p,
                              seed=1234)
    jax.block_until_ready(out)
    assert out.shape == (B, S, H)
    assert bool(jnp.all(jnp.isfinite(out)))

    print("KERNEL_OK")
</pallas_src>

<mosaic_0001>
module attributes {stable_mosaic.version = 11 : i64} {
  func.func @_sublayer_conn_kernel(%arg0: i32, %arg1: memref<1xi32, #tpu.memory_space<smem>>, %arg2: memref<16x32xf32, #tpu.memory_space<vmem>>, %arg3: memref<32x32xf32, #tpu.memory_space<vmem>>, %arg4: memref<1x32xf32, #tpu.memory_space<vmem>>, %arg5: memref<1x32xf32, #tpu.memory_space<vmem>>, %arg6: memref<1x32xf32, #tpu.memory_space<vmem>>, %arg7: memref<16x32xf32, #tpu.memory_space<vmem>>) attributes {dimension_semantics = [#tpu.dimension_semantics<parallel>], iteration_bounds = array<i64: 1>, scalar_prefetch = 1 : i64, scratch_operands = 0 : i64, tpu.core_type = #tpu.core_type<tc>, window_params = [{transform_indices = @transform_0, window_bounds = array<i64: 16, 32>}, {pipeline_mode = #tpu.pipeline_mode<synchronous>, transform_indices = @transform_1, window_bounds = array<i64: 32, 32>}, {pipeline_mode = #tpu.pipeline_mode<synchronous>, transform_indices = @transform_2, window_bounds = array<i64: 1, 32>}, {pipeline_mode = #tpu.pipeline_mode<synchronous>, transform_indices = @transform_3, window_bounds = array<i64: 1, 32>}, {pipeline_mode = #tpu.pipeline_mode<synchronous>, transform_indices = @transform_4, window_bounds = array<i64: 1, 32>}, {transform_indices = @transform_5, window_bounds = array<i64: 16, 32>}]} {
    %c0 = arith.constant 0 : index
    %c0_0 = arith.constant 0 : index
    %0 = vector.load %arg2[%c0, %c0_0] : memref<16x32xf32, #tpu.memory_space<vmem>>, vector<16x32xf32>
    %c0_1 = arith.constant 0 : index
    %c0_2 = arith.constant 0 : index
    %1 = vector.load %arg3[%c0_1, %c0_2] : memref<32x32xf32, #tpu.memory_space<vmem>>, vector<32x32xf32>
    %cst = arith.constant dense<0.000000e+00> : vector<16x32xf32>
    %2 = tpu.matmul %0, %1, %cst {dimension_numbers = #tpu.dot_dimension_numbers<[1], [0], [0], [1], [0, 0, 1, 1], [], []>, precision = #tpu.contract_precision<fp32>} : vector<16x32xf32>, vector<32x32xf32>, vector<16x32xf32> -> vector<16x32xf32>
    %c0_3 = arith.constant 0 : index
    %c0_4 = arith.constant 0 : index
    %3 = vector.load %arg4[%c0_3, %c0_4] : memref<1x32xf32, #tpu.memory_space<vmem>>, vector<1x32xf32>
    %4 = vector.broadcast %3 : vector<1x32xf32> to vector<16x32xf32>
    %5 = arith.addf %2, %4 : vector<16x32xf32>
    %6 = arith.addf %0, %5 : vector<16x32xf32>
    %cst_5 = arith.constant dense<0.000000e+00> : vector<16xf32>
    %7 = vector.multi_reduction <add>, %6, %cst_5 [1] : vector<16x32xf32> to vector<16xf32>
    %8 = vector.shape_cast %7 : vector<16xf32> to vector<16x1xf32>
    %cst_6 = arith.constant 3.200000e+01 : f32
    %9 = vector.broadcast %cst_6 : f32 to vector<16x1xf32>
    %10 = arith.divf %8, %9 : vector<16x1xf32>
    %11 = vector.broadcast %10 : vector<16x1xf32> to vector<16x32xf32>
    %12 = arith.subf %6, %11 : vector<16x32xf32>
    %13 = arith.mulf %12, %12 : vector<16x32xf32>
    %cst_7 = arith.constant dense<0.000000e+00> : vector<16xf32>
    %14 = vector.multi_reduction <add>, %13, %cst_7 [1] : vector<16x32xf32> to vector<16xf32>
    %15 = vector.shape_cast %14 : vector<16xf32> to vector<16x1xf32>
    %cst_8 = arith.constant 3.200000e+01 : f32
    %16 = vector.broadcast %cst_8 : f32 to vector<16x1xf32>
    %17 = arith.divf %15, %16 : vector<16x1xf32>
    %18 = vector.broadcast %10 : vector<16x1xf32> to vector<16x32xf32>
    %19 = arith.subf %6, %18 : vector<16x32xf32>
    %cst_9 = arith.constant 9.99999974E-6 : f32
    %20 = vector.broadcast %cst_9 : f32 to vector<16x1xf32>
    %21 = arith.addf %17, %20 : vector<16x1xf32>
    %22 = math.rsqrt %21 : vector<16x1xf32>
    %23 = vector.broadcast %22 : vector<16x1xf32> to vector<16x32xf32>
    %24 = arith.mulf %19, %23 : vector<16x32xf32>
    %c0_10 = arith.constant 0 : index
    %c0_11 = arith.constant 0 : index
    %25 = vector.load %arg5[%c0_10, %c0_11] : memref<1x32xf32, #tpu.memory_space<vmem>>, vector<1x32xf32>
    %26 = vector.broadcast %25 : vector<1x32xf32> to vector<16x32xf32>
    %27 = arith.mulf %24, %26 : vector<16x32xf32>
    %c0_12 = arith.constant 0 : index
    %c0_13 = arith.constant 0 : index
    %28 = vector.load %arg6[%c0_12, %c0_13] : memref<1x32xf32, #tpu.memory_space<vmem>>, vector<1x32xf32>
    %29 = vector.broadcast %28 : vector<1x32xf32> to vector<16x32xf32>
    %30 = arith.addf %27, %29 : vector<16x32xf32>
    %c0_14 = arith.constant 0 : index
    %c0_15 = arith.constant 0 : index
    %31 = vector.load %arg7[%c0_14, %c0_15] : memref<16x32xf32, #tpu.memory_space<vmem>>, vector<16x32xf32>
    tpu.vector_store %arg7[%c0_14, %c0_15], %30 {strides = array<i32>} : memref<16x32xf32, #tpu.memory_space<vmem>>, vector<16x32xf32>,
    return
  }
  func.func @transform_0(%arg0: i32, %arg1: memref<1xi32, #tpu.memory_space<smem>>) -> (i32, i32) {
    %c0_i32 = arith.constant 0 : i32
    %c0_i32_0 = arith.constant 0 : i32
    return %arg0, %c0_i32 : i32, i32
  }
  func.func @transform_1(%arg0: i32, %arg1: memref<1xi32, #tpu.memory_space<smem>>) -> (i32, i32) {
    %c0_i32 = arith.constant 0 : i32
    %c0_i32_0 = arith.constant 0 : i32
    %c0_i32_1 = arith.constant 0 : i32
    return %c0_i32, %c0_i32_0 : i32, i32
  }
  func.func @transform_2(%arg0: i32, %arg1: memref<1xi32, #tpu.memory_space<smem>>) -> (i32, i32) {
    %c0_i32 = arith.constant 0 : i32
    %c0_i32_0 = arith.constant 0 : i32
    %c0_i32_1 = arith.constant 0 : i32
    return %c0_i32, %c0_i32_0 : i32, i32
  }
  func.func @transform_3(%arg0: i32, %arg1: memref<1xi32, #tpu.memory_space<smem>>) -> (i32, i32) {
    %c0_i32 = arith.constant 0 : i32
    %c0_i32_0 = arith.constant 0 : i32
    %c0_i32_1 = arith.constant 0 : i32
    return %c0_i32, %c0_i32_0 : i32, i32
  }
  func.func @transform_4(%arg0: i32, %arg1: memref<1xi32, #tpu.memory_space<smem>>) -> (i32, i32) {
    %c0_i32 = arith.constant 0 : i32
    %c0_i32_0 = arith.constant 0 : i32
    %c0_i32_1 = arith.constant 0 : i32
    return %c0_i32, %c0_i32_0 : i32, i32
  }
  func.func @transform_5(%arg0: i32, %arg1: memref<1xi32, #tpu.memory_space<smem>>) -> (i32, i32) {
    %c0_i32 = arith.constant 0 : i32
    %c0_i32_0 = arith.constant 0 : i32
    return %arg0, %c0_i32 : i32, i32
  }
}

</mosaic_0001>

<bundles_post_ra>
// kernel: tpu_custom_call.1
= control target key start
LH: loop header
LB: loop body
LE: loop exit
PB: predicated region body
PF: predicated region fallthrough
CT: control target
= control target key end

     0   :  { %12 = vsyncpa [#allocation5], 0  ;;  %s1034_s0 = inlined_call_operand.<no memory space> [shape: s32[1], index: 0, kind: input, shape index: {}]   ;;  %s1035_s1 = inlined_call_operand.hbm [shape: f32[16,32], index: 1, kind: input, shape index: {}]   ;;  %s1036_s2 = inlined_call_operand.hbm [shape: f32[32,32], index: 2, kind: input, shape index: {}]   ;;  %s1037_s3 = inlined_call_operand.vmem [shape: f32[1,32], index: 3, kind: input, shape index: {}]   ;;  %s1038_s4 = inlined_call_operand.vmem [shape: f32[1,32], index: 4, kind: input, shape index: {}]   ;;  %s1039_s5 = inlined_call_operand.vmem [shape: f32[1,32], index: 5, kind: input, shape index: {}]   ;;  %s1040_s6 = inlined_call_operand.hbm [shape: f32[16,32], index: 6, kind: output, shape index: {}]  }
   0x1   :  { %13 = vsyncpa [#allocation8], 0 }
   0x2   :  { %14 = vsyncpa [#allocation6], 0  ;;  %s912_s0 = smov [#allocation4]   ;;  %s840_s24 = scalar_lea.hbm %s1035_s1, 256 }
   0x3   :  { %s20_s21 = sshll.u32 %s912_s0, 4  ;;  %p841_p0 = scmp.ne.s32.totalorder %s1035_s1, %s840_s24  ;;  %s21_s21 = int_to_ptr.vmem [resolvable:$true] %s20_s21 }
   0x4   :  { %p844_p1 = scmp.lt.u32.totalorder %s840_s24, %s1035_s1 }
   0x6   :  { %p846_p2 = pnand %p844_p1, %p841_p0 }
   0x8   :  { %849 = shalt.err (!%p846_p2)
}
   0x9   :  { %s850_s29 = scalar_lea.vmem %s21_s21, 256  ;;  %p855_p4 = scmp.lt.s32.totalorder %s21_s21, %s21_s21 }
   0xa   :  { %p851_p3 = scmp.ne.s32.totalorder %s21_s21, %s850_s29  ;;  %p856_p5 = scmp.lt.s32.totalorder %s850_s29, %s850_s29 }
   0xc   :  { %p857_p6 = por %p856_p5, %p855_p4 }
   0xe   :  { %p858_p7 = pnand %p857_p6, %p851_p3 }
  0x10   :  { %861 = shalt.err (!%p858_p7)
}
  0x11   :  { %s913_s30 = smov 128   ;;  %s914_s7 = smov 8  }
  0x12   :  { %26 = dma.hbm_to_vmem [thread:$0]  %s1035_s1, 256, %s21_s21, [#allocation5], %s913_s30, %s913_s30, %s914_s7  }
  0x13   :  { %s915_s10 = smov [#allocation7]   ;;  %s862_s14 = scalar_lea.hbm %s1036_s2, 512 }
  0x14   :  { %s32_s11 = sshll.u32 %s915_s10, 4  ;;  %p863_p8 = scmp.ne.s32.totalorder %s1036_s2, %s862_s14  ;;  %s33_s11 = int_to_ptr.vmem [resolvable:$true] %s32_s11 }
  0x15   :  { %p866_p9 = scmp.lt.u32.totalorder %s862_s14, %s1036_s2 }
  0x17   :  { %p868_p10 = pnand %p866_p9, %p863_p8 }
  0x19   :  { %871 = shalt.err (!%p868_p10)
}
  0x1a   :  { %s872_s19 = scalar_lea.vmem %s33_s11, 512  ;;  %p877_p12 = scmp.lt.s32.totalorder %s33_s11, %s33_s11 }
  0x1b   :  { %p873_p11 = scmp.ne.s32.totalorder %s33_s11, %s872_s19  ;;  %p878_p13 = scmp.lt.s32.totalorder %s872_s19, %s872_s19 }
  0x1d   :  { %p879_p0 = por %p878_p13, %p877_p12 }
  0x1f   :  { %p880_p1 = pnand %p879_p0, %p873_p11 }
  0x21   :  { %883 = shalt.err (!%p880_p1)
}
  0x22   :  { %38 = dma.hbm_to_vmem [thread:$0]  %s1036_s2, 512, %s33_s11, [#allocation8], %s913_s30, %s913_s30, %s914_s7  }
  0x23   :  { %906 = dma.done.wait [#allocation5], 256  }
  0x24   :  { %907 = vsyncadd [#allocation5], 4294967040 }
  0x25   :  { %908 = dma.done.wait [#allocation8], 512  }
  0x26   :  { %909 = vsyncadd [#allocation8], 4294966784  ;;  %vm64_vm0 = vcmask 261120   ;;  %v53_v0 = vld [vmem:[#allocation7] sm:$0xff]  ;;  %v54_v1 = vld [vmem:[#allocation7 + $0x8] sm:$0xff]  ;;  %s916_s24 = smov [#allocation9]  }
  0x27   :  { %v55_v2 = vld [vmem:[#allocation7 + $0x10] sm:$0xff]  ;;  %v72_v3 = vand.u32 4294901760, %v53_v0  ;;  %v75_v4 = vand.u32 4294901760, %v54_v1  ;;  %v56_v5 = vld [vmem:[#allocation7 + $0x18] sm:$0xff]  ;;  %s653_s25 = sshll.u32 %s916_s24, 4  ;;  %s654_s25 = int_to_ptr.vmem [resolvable:$true] %s653_s25 }
  0x28   :  { %v78_v6 = vand.u32 4294901760, %v55_v2  ;;  %v982_v7 = vld [vmem:[#allocation4] sm:$0xff]  ;;  %v984_v8 = vld [vmem:[#allocation4 + $0x8] sm:$0xff]  ;;  %v81_v9 = vand.u32 4294901760, %v56_v5  ;;  %s884_s26 = scalar_lea.vmem %s654_s25, 256  ;;  %p889_p3 = scmp.lt.s32.totalorder %s654_s25, %s654_s25 }
  0x29   :  { %v66_v10 = vsel %vm64_vm0, %v982_v7, 0  ;;  %v69_v11 = vsel %vm64_vm0, %v984_v8, 0  ;;  %v771_v12 = vpack.c.bf16 %v75_v4, %v72_v3  ;;  %v162_v15 = vsub.f32 %v53_v0, %v72_v3  ;;  %v666_v46 = vld [vmem:[%s1037_s3] ss:$0 sm:$0xff]  ;;  %p885_p2 = scmp.ne.s32.totalorder %s654_s25, %s884_s26  ;;  %p890_p4 = scmp.lt.s32.totalorder %s884_s26, %s884_s26 }
  0x2a   :  { %v990_v13 = vand.u32 4294901760, %v66_v10  ;;  %v992_v14 = vand.u32 4294901760, %v69_v11  ;;  %v775_v16 = vpack.c.bf16 %v81_v9, %v78_v6  ;;  %v169_v17 = vsub.f32 %v54_v1, %v75_v4 }
  0x2b   :  { %v176_v18 = vsub.f32 %v55_v2, %v78_v6  ;;  %v183_v19 = vsub.f32 %v56_v5, %v81_v9  ;;  %772 = vmatprep.subr.bf16.mxu1 %v771_v12  ;;  %796 = vmatprep.subr.bf16.mxu0 %v771_v12  ;;  %v163_v22 = vand.u32 4294901760, %v162_v15  ;;  %p891_p5 = por %p890_p4, %p889_p3 }
  0x2c   :  { %v141_v20 = vsub.f32 %v66_v10, %v990_v13  ;;  %v151_v21 = vsub.f32 %v69_v11, %v992_v14  ;;  %774 = vmatpush3.bf16.msra.mxu1 %v771_v12  ;;  %798 = vmatpush3.bf16.msra.mxu0 %v771_v12  ;;  %v170_v23 = vand.u32 4294901760, %v169_v17  ;;  %v787_v44 = vpack.c.bf16 %v169_v17, %v162_v15 }
  0x2d   :  { %v177_v24 = vand.u32 4294901760, %v176_v18  ;;  %v184_v25 = vand.u32 4294901760, %v183_v19  ;;  %776 = vmatprep.subr.bf16.mxu1 %v775_v16  ;;  %800 = vmatprep.subr.bf16.mxu0 %v775_v16  ;;  %v164_v28 = vsub.f32 %v162_v15, %v163_v22  ;;  %v791_v45 = vpack.c.bf16 %v183_v19, %v176_v18  ;;  %p892_p6 = pnand %p891_p5, %p885_p2 }
  0x2e   :  { %v142_v26 = vand.u32 4294901760, %v141_v20  ;;  %v152_v27 = vand.u32 4294901760, %v151_v21  ;;  %v171_v29 = vsub.f32 %v169_v17, %v170_v23  ;;  %v803_v30 = vpack.c.bf16 %v170_v23, %v163_v22 }
  0x2f   :  { %v178_v31 = vsub.f32 %v176_v18, %v177_v24  ;;  %v185_v32 = vsub.f32 %v183_v19, %v184_v25  ;;  %v165_v35 = vand.u32 4294901760, %v164_v28  ;;  %v807_v43 = vpack.c.bf16 %v184_v25, %v177_v24 }
  0x30   :  { %v143_v33 = vsub.f32 %v141_v20, %v142_v26  ;;  %746 = vmatprep.mubr.f32.mxu0 %v142_v26  ;;  %v153_v34 = vsub.f32 %v151_v21, %v152_v27  ;;  %778 = vmatpush3.bf16.msra.mxu1 %v775_v16  ;;  %v172_v36 = vand.u32 4294901760, %v171_v29 }
  0x31   :  { %802 = vmatpush3.bf16.msra.mxu0 %v775_v16  ;;  %v179_v37 = vand.u32 4294901760, %v178_v31  ;;  %v186_v38 = vand.u32 4294901760, %v185_v32 }
  0x32   :  { %v144_v39 = vand.u32 4294901760, %v143_v33  ;;  %v154_v40 = vand.u32 4294901760, %v153_v34  ;;  %804 = vmatprep.subr.bf16.mxu0 %v803_v30  ;;  %v779_v41 = vpack.c.bf16 %v172_v36, %v165_v35 }
  0x33   :  { %v783_v42 = vpack.c.bf16 %v186_v38, %v179_v37 }
  0x34   :  { %713 = vmatprep.mubr.f32.mxu1 %v144_v39  ;;  %747 = vmatmul.mubr.f32.vlgmr.msra.gmra.mrb[0].mxu0 %v152_v27 }
  0x35   :  { %714 = vmatmul.mubr.f32.vlgmr.msra.gmra.mrb[0].mxu1 %v154_v40  ;;  %780 = vmatprep.subr.bf16.mxu1 %v779_v41 }
  0x36   :  { %782 = vmatpush3.bf16.msra.mxu1 %v779_v41  ;;  %806 = vmatpush3.bf16.msra.mxu0 %v803_v30 }
  0x37   :  { %784 = vmatprep.subr.bf16.mxu1 %v783_v42  ;;  %808 = vmatprep.subr.bf16.mxu0 %v807_v43 }
  0x38   :  { %724 = vmatprep.mubr.f32.mxu1 %v990_v13  ;;  %757 = vmatprep.mubr.f32.mxu0 %v990_v13 }
  0x3a   :  { %786 = vmatpush3.bf16.msra.mxu1 %v783_v42  ;;  %810 = vmatpush3.bf16.msra.mxu0 %v807_v43 }
  0x3b   :  { %788 = vmatprep.subr.bf16.mxu1 %v787_v44  ;;  %812 = vmatprep.subr.bf16.mxu0 %v771_v12 }
  0x3d   :  { %725 = vmatmul.mubr.f32.vlgmr.msra.gmra.mrb[0].mxu1 %v992_v14  ;;  %758 = vmatmul.mubr.f32.vlgmr.msra.gmra.mrb[0].mxu0 %v992_v14 }
  0x3e   :  { %790 = vmatpush3.bf16.msra.mxu1 %v787_v44  ;;  %814 = vmatpush3.bf16.msra.mxu0 %v771_v12  ;;  %v667_v12 = vld [vmem:[%s1038_s4] ss:$0 sm:$0xff] }
  0x3f   :  { %792 = vmatprep.subr.bf16.mxu1 %v791_v45  ;;  %816 = vmatprep.subr.bf16.mxu0 %v775_v16 }
  0x40   :  { %735 = vmatprep.mubr.f32.mxu1 %v141_v20  ;;  %768 = vmatprep.mubr.f32.mxu0 %v990_v13 }
  0x42   :  { %794 = vmatpush3.bf16.msra.mxu1 %v791_v45  ;;  %818 = vmatpush3.bf16.msra.mxu0 %v775_v16 }
  0x45   :  { %736 = vmatmul.mubr.f32.vlgmr.msra.gmra.mrb[0].mxu1 %v151_v21  ;;  %769 = vmatmul.mubr.f32.vlgmr.msra.gmra.mrb[0].mxu0 %v992_v14  ;;  %v668_v14 = vld [vmem:[%s1039_s5] ss:$0 sm:$0xff] }
 0x118   :  { %v737_v47 = vpop.f32.mrb[0].mxu1  ;;  %v770_v48 = vpop.f32.mrb[0].mxu0 }
 0x119   :  { %v819_v49 = vadd.f32 %v737_v47, %v666_v46  ;;  %v333_v50 = vpop.f32.mrb[1].mxu1  ;;  %v589_v51 = vpop.f32.mrb[1].mxu0 }
 0x11a   :  { %v821_v52 = vadd.f32 %v666_v46, %v333_v50 }
 0x11b   :  { %v820_v53 = vadd.f32 %v819_v49, %v770_v48 }
 0x11c   :  { %v822_v54 = vadd.f32 %v821_v52, %v589_v51 }
 0x11d   :  { %v600_v57 = vadd.f32 %v820_v53, %v984_v8 }
 0x11e   :  { %v599_v55 = vadd.f32 %v822_v54, %v982_v7 }
 0x11f   :  { %v604_v58 = vsel %vm64_vm0, %v600_v57, 0.0 }
 0x120   :  { %v601_v56 = vsel %vm64_vm0, %v599_v55, 0.0 }
 0x121   :  { %602 = vadd.xlane.f32.xlu0 %v601_v56 }
 0x125   :  { %605 = vadd.xlane.f32.xlu0 %v604_v58 }
 0x1ae   :  { %v603_v59 = vpop.xlane.xlu0 %602 }
 0x1af   :  { %v608_v60 = vmul.f32 0.03125, %v603_v59 }
 0x1b1   :  { %v610_v61 = vsub.f32 %v599_v55, %v608_v60 }
 0x1b2   :  { %v606_v62 = vpop.xlane.xlu0 %605 }
 0x1b3   :  { %v609_v63 = vmul.f32 0.03125, %v606_v62  ;;  %v612_v0 = vmul.f32 %v610_v61, %v610_v61 }
 0x1b5   :  { %v611_v1 = vsub.f32 %v600_v57, %v609_v63  ;;  %v614_v2 = vsel %vm64_vm0, %v612_v0, 0.0 }
 0x1b6   :  { %615 = vadd.xlane.f32.xlu1 %v614_v2 }
 0x1b7   :  { %v613_v3 = vmul.f32 %v611_v1, %v611_v1 }
 0x1b9   :  { %v617_v4 = vsel %vm64_vm0, %v613_v3, 0.0 }
 0x1ba   :  { %618 = vadd.xlane.f32.xlu1 %v617_v4 }
 0x243   :  { %v616_v5 = vpop.xlane.xlu1 %615 }
 0x244   :  { %v620_v6 = vmul.f32 0.03125, %v616_v5 }
 0x246   :  { %v622_v7 = vadd.f32 1e-05, %v620_v6 }
 0x247   :  { %v619_v8 = vpop.xlane.xlu1 %618 }
 0x248   :  { %836 = vrsqrt.f32 %v622_v7  ;;  %v621_v9 = vmul.f32 0.03125, %v619_v8 }
 0x24a   :  { %v623_v10 = vadd.f32 1e-05, %v621_v9 }
 0x24c   :  { %838 = vrsqrt.f32 %v623_v10 }
 0x252   :  { %v837_v11 = vpop.eup %836 }
 0x253   :  { %v626_v13 = vmul.f32 %v837_v11, %v610_v61 }
 0x255   :  { %v635_v15 = vmul.f32 %v667_v12, %v626_v13 }
 0x256   :  { %v839_v16 = vpop.eup %838 }
 0x257   :  { %v627_v17 = vmul.f32 %v839_v16, %v611_v1  ;;  %v644_v18 = vadd.f32 %v668_v14, %v635_v15 }
 0x259   :  { %v636_v19 = vmul.f32 %v667_v12, %v627_v17  ;;  %646 = vst.msk [vmem:[#allocation9] sm:$0xff] %vm64_vm0, %v644_v18 }
 0x25b   :  { %v645_v20 = vadd.f32 %v668_v14, %v636_v19 }
 0x25d   :  { %647 = vst.msk [vmem:[#allocation9 + $0x8] sm:$0xff] %vm64_vm0, %v645_v20 }
 0x25e   :  { %895 = shalt.err (!%p892_p6)
}
 0x25f   :  { %s896_s27 = scalar_lea.hbm %s1040_s6, 256 }
 0x260   :  { %p897_p7 = scmp.ne.s32.totalorder %s1040_s6, %s896_s27  ;;  %p900_p8 = scmp.lt.u32.totalorder %s896_s27, %s1040_s6 }
 0x262   :  { %p902_p9 = pnand %p900_p8, %p897_p7 }
 0x264   :  { %905 = shalt.err (!%p902_p9)
}
 0x265   :  { %659 = dma.vmem_to_hbm [thread:$0]  %s654_s25, 256, %s1040_s6, [#allocation6], %s913_s30, %s913_s30, %s914_s7  }
 0x266   :  { %910 = dma.done.wait [#allocation6], 256  }
 0x267   :  { %911 = vsyncadd [#allocation6], 4294967040 }
 0x268   :  { %663 = vsyncpa [#allocation5], 1 }
 0x269   :  { %664 = vsyncpa [#allocation8], 1 }
 0x26a   :  { %665 = vsyncpa [#allocation6], 1 }

</bundles_post_ra>
